<compile_context>
chip_gen: v7x
topology: tpu7x:2x2x1
jax: 0.10.0
libtpu: 0.0.40
codegen_flags: <defaults>
</compile_context>

<pallas_src>
import functools

import jax
import jax.numpy as jnp
from jax.experimental import pallas as pl
from jax.experimental.pallas import tpu as pltpu

LEAKY_SLOPE = 0.01  # PyTorch F.leaky_relu default negative_slope


# ----------------------------------------------------------------------------
# Pallas kernel: fused  leaky_relu(leaky_relu(x @ W1 + b1) @ W2 + b2)
# ----------------------------------------------------------------------------
def _leaky(y, slope):
    return jnp.where(y >= 0.0, y, slope * y)


def _fcn_kernel(x_ref, w1_ref, b1_ref, w2_ref, b2_ref, o_ref, *, slope):
    # Input tile arrives as f32 straight from HBM; cast to bf16 on the VPU
    # (free while HBM-bound) so the MXU runs the bf16 path.
    x = x_ref[...].astype(w1_ref.dtype)
    # fc1: bf16 operands, f32 accumulate, fused bias + LeakyReLU epilogue (f32).
    h = jnp.dot(x, w1_ref[...], preferred_element_type=jnp.float32)
    h = _leaky(h + b1_ref[...], slope)
    # fc2: hidden activations never leave VMEM.
    y = jnp.dot(h.astype(w2_ref.dtype), w2_ref[...],
                preferred_element_type=jnp.float32)
    y = _leaky(y + b2_ref[...], slope)
    # bf16 writeback -- halves the dominant HBM output stream.
    o_ref[...] = y.astype(o_ref.dtype)


# ----------------------------------------------------------------------------
# Wrappers
# ----------------------------------------------------------------------------
def _round_up(x, m):
    return ((x + m - 1) // m) * m


def fcn_forward(x, prepped, *, dim_out, tm=1024, slice_output=True):
    """x: (B, dim_in) f32.  prepped: dict from prepare_params.

    Returns (B, dim_out) bf16 if slice_output else the padded (Bp, Np) bf16
    lane-dense slab (padded columns are exact zeros by construction)."""
    w1, b1, w2, b2 = prepped["w1"], prepped["b1"], prepped["w2"], prepped["b2"]
    B, Din = x.shape
    assert Din == w1.shape[0]
    H = w1.shape[1]
    Np = w2.shape[1]

    # TODO(synk): Dropout(p=0.1) is identity in eval mode; stochastic
    # training-mode dropout (pltpu.prng_*) is not implemented here.

    # ---- batch tiling -------------------------------------------------------
    tm = min(max(tm, 8), 4096)          # cap so a tm sweep stays well inside
    Bp0 = _round_up(B, 8)               # sublane alignment
    tm_eff = min(tm, Bp0)
    # v7x megacore: if one tile would cover a *large* batch, split it in two
    # so the parallel grid axis has >= 2 steps and both TensorCores get work.
    if Bp0 > 256 and Bp0 <= tm_eff:
        tm_eff = _round_up((Bp0 + 1) // 2, 8)
    Bp = _round_up(Bp0, tm_eff)         # padded batch evenly divides into tiles

    # Only pad when needed; x stays f32 (cast to bf16 happens inside the kernel).
    if Bp != B:
        x = jnp.pad(x, ((0, Bp - B), (0, 0)))

    out = pl.pallas_call(
        functools.partial(_fcn_kernel, slope=LEAKY_SLOPE),
        out_shape=jax.ShapeDtypeStruct((Bp, Np), jnp.bfloat16),
        grid_spec=pltpu.PrefetchScalarGridSpec(
            num_scalar_prefetch=0,
            grid=(Bp // tm_eff,),
            in_specs=[
                pl.BlockSpec((tm_eff, Din), lambda i: (i, 0)),  # x tile (f32)
                pl.BlockSpec((Din, H), lambda i: (0, 0)),       # W1 (resident)
                pl.BlockSpec((1, H), lambda i: (0, 0)),         # b1
                pl.BlockSpec((H, Np), lambda i: (0, 0)),        # W2 (resident)
                pl.BlockSpec((1, Np), lambda i: (0, 0)),        # b2
            ],
            out_specs=pl.BlockSpec((tm_eff, Np), lambda i: (i, 0)),
        ),
        compiler_params=pltpu.CompilerParams(
            dimension_semantics=("parallel",),
            vmem_limit_bytes=32 * 1024 * 1024),
    )(x, w1, b1, w2, b2)

    if slice_output:
        return out[:B, :dim_out]
    return out


# ----------------------------------------------------------------------------
# Parameters: init (PyTorch nn.Linear-style) + one-time kernel prep
# ----------------------------------------------------------------------------
def init_params(key, dim_in=128, dim_out=64, hidden=128):
    k1, k2, k3, k4 = jax.random.split(key, 4)
    lim1 = 1.0 / float(jnp.sqrt(jnp.float32(dim_in)))
    lim2 = 1.0 / float(jnp.sqrt(jnp.float32(hidden)))
    return {
        # stored as (in, out) == transpose of PyTorch's (out, in) weight layout
        "w1": jax.random.uniform(k1, (dim_in, hidden), jnp.float32, -lim1, lim1),
        "b1": jax.random.uniform(k2, (hidden,), jnp.float32, -lim1, lim1),
        "w2": jax.random.uniform(k3, (hidden, dim_out), jnp.float32, -lim2, lim2),
        "b2": jax.random.uniform(k4, (dim_out,), jnp.float32, -lim2, lim2),
    }


def prepare_params(params, *, weight_dtype=jnp.bfloat16):
    """One-time prep (outside the per-call path): zero-pad dim_out up to a
    lane-dense multiple of 128, reshape biases to (1, N) rows, cast weights to
    bf16.  Zero-padded W2/b2 columns guarantee the padded output columns are
    exact zeros, so the padded slab can be consumed directly."""
    w1, b1, w2, b2 = params["w1"], params["b1"], params["w2"], params["b2"]
    dim_out = w2.shape[1]
    n_pad = _round_up(dim_out, 128) - dim_out
    return {
        "w1": w1.astype(weight_dtype),
        "b1": b1.reshape(1, -1).astype(jnp.float32),
        "w2": jnp.pad(w2, ((0, 0), (0, n_pad))).astype(weight_dtype),
        "b2": jnp.pad(b2, ((0, n_pad),)).reshape(1, -1).astype(jnp.float32),
    }


# ----------------------------------------------------------------------------
if __name__ == "__main__":
    key = jax.random.PRNGKey(0)
    k_param, k_input = jax.random.split(key)

    DIM_IN, DIM_OUT, BATCH = 128, 64, 2
    params = init_params(k_param, dim_in=DIM_IN, dim_out=DIM_OUT)
    prepped = prepare_params(params)

    x = jax.random.normal(k_input, (BATCH, DIM_IN), jnp.float32)

    fwd = jax.jit(fcn_forward, static_argnames=("dim_out", "tm", "slice_output"))
    out = fwd(x, prepped, dim_out=DIM_OUT)
    out = jax.block_until_ready(out)

    # Pure-JAX f32 reference (Dropout is identity in eval mode).
    def ref_forward(xr, p, slope=LEAKY_SLOPE):
        h = xr @ p["w1"] + p["b1"]
        h = jnp.where(h >= 0, h, slope * h)
        y = h @ p["w2"] + p["b2"]
        return jnp.where(y >= 0, y, slope * y)

    ref = ref_forward(x, params)
    out_f32 = out.astype(jnp.float32)

    assert out.shape == (BATCH, DIM_OUT), out.shape
    assert out.dtype == jnp.bfloat16, out.dtype
    assert bool(jnp.all(jnp.isfinite(out_f32)))
    assert bool(jnp.allclose(out_f32, ref, atol=5e-2, rtol=5e-2)), \
        float(jnp.max(jnp.abs(out_f32 - ref)))
    print("KERNEL_OK")
</pallas_src>

<mosaic_0001>
module attributes {stable_mosaic.version = 11 : i64} {
  func.func @_fcn_kernel(%arg0: i32, %arg1: memref<8x128xf32, #tpu.memory_space<vmem>>, %arg2: memref<128x128xbf16, #tpu.memory_space<vmem>>, %arg3: memref<1x128xf32, #tpu.memory_space<vmem>>, %arg4: memref<128x128xbf16, #tpu.memory_space<vmem>>, %arg5: memref<1x128xf32, #tpu.memory_space<vmem>>, %arg6: memref<8x128xbf16, #tpu.memory_space<vmem>>) attributes {dimension_semantics = [#tpu.dimension_semantics<parallel>], iteration_bounds = array<i64: 1>, scalar_prefetch = 0 : i64, scratch_operands = 0 : i64, tpu.core_type = #tpu.core_type<tc>, window_params = [{transform_indices = @transform_0, window_bounds = array<i64: 8, 128>}, {pipeline_mode = #tpu.pipeline_mode<synchronous>, transform_indices = @transform_1, window_bounds = array<i64: 128, 128>}, {pipeline_mode = #tpu.pipeline_mode<synchronous>, transform_indices = @transform_2, window_bounds = array<i64: 1, 128>}, {pipeline_mode = #tpu.pipeline_mode<synchronous>, transform_indices = @transform_3, window_bounds = array<i64: 128, 128>}, {pipeline_mode = #tpu.pipeline_mode<synchronous>, transform_indices = @transform_4, window_bounds = array<i64: 1, 128>}, {transform_indices = @transform_5, window_bounds = array<i64: 8, 128>}]} {
    %c0 = arith.constant 0 : index
    %c0_0 = arith.constant 0 : index
    %0 = vector.load %arg1[%c0, %c0_0] : memref<8x128xf32, #tpu.memory_space<vmem>>, vector<8x128xf32>
    %1 = arith.truncf %0 : vector<8x128xf32> to vector<8x128xbf16>
    %c0_1 = arith.constant 0 : index
    %c0_2 = arith.constant 0 : index
    %2 = vector.load %arg2[%c0_1, %c0_2] : memref<128x128xbf16, #tpu.memory_space<vmem>>, vector<128x128xbf16>
    %cst = arith.constant dense<0.000000e+00> : vector<8x128xf32>
    %3 = tpu.matmul %1, %2, %cst {dimension_numbers = #tpu.dot_dimension_numbers<[1], [0], [0], [1], [0, 0, 1, 1], [], []>} : vector<8x128xbf16>, vector<128x128xbf16>, vector<8x128xf32> -> vector<8x128xf32>
    %c0_3 = arith.constant 0 : index
    %c0_4 = arith.constant 0 : index
    %4 = vector.load %arg3[%c0_3, %c0_4] : memref<1x128xf32, #tpu.memory_space<vmem>>, vector<1x128xf32>
    %5 = vector.broadcast %4 : vector<1x128xf32> to vector<8x128xf32>
    %6 = arith.addf %3, %5 : vector<8x128xf32>
    %cst_5 = arith.constant 0.000000e+00 : f32
    %7 = vector.broadcast %cst_5 : f32 to vector<8x128xf32>
    %8 = arith.cmpf oge, %6, %7 : vector<8x128xf32>
    %cst_6 = arith.constant 0.00999999977 : f32
    %9 = vector.broadcast %cst_6 : f32 to vector<8x128xf32>
    %10 = arith.mulf %9, %6 : vector<8x128xf32>
    %11 = arith.select %8, %6, %10 : vector<8x128xi1>, vector<8x128xf32>
    %12 = arith.truncf %11 : vector<8x128xf32> to vector<8x128xbf16>
    %c0_7 = arith.constant 0 : index
    %c0_8 = arith.constant 0 : index
    %13 = vector.load %arg4[%c0_7, %c0_8] : memref<128x128xbf16, #tpu.memory_space<vmem>>, vector<128x128xbf16>
    %cst_9 = arith.constant dense<0.000000e+00> : vector<8x128xf32>
    %14 = tpu.matmul %12, %13, %cst_9 {dimension_numbers = #tpu.dot_dimension_numbers<[1], [0], [0], [1], [0, 0, 1, 1], [], []>} : vector<8x128xbf16>, vector<128x128xbf16>, vector<8x128xf32> -> vector<8x128xf32>
    %c0_10 = arith.constant 0 : index
    %c0_11 = arith.constant 0 : index
    %15 = vector.load %arg5[%c0_10, %c0_11] : memref<1x128xf32, #tpu.memory_space<vmem>>, vector<1x128xf32>
    %16 = vector.broadcast %15 : vector<1x128xf32> to vector<8x128xf32>
    %17 = arith.addf %14, %16 : vector<8x128xf32>
    %cst_12 = arith.constant 0.000000e+00 : f32
    %18 = vector.broadcast %cst_12 : f32 to vector<8x128xf32>
    %19 = arith.cmpf oge, %17, %18 : vector<8x128xf32>
    %cst_13 = arith.constant 0.00999999977 : f32
    %20 = vector.broadcast %cst_13 : f32 to vector<8x128xf32>
    %21 = arith.mulf %20, %17 : vector<8x128xf32>
    %22 = arith.select %19, %17, %21 : vector<8x128xi1>, vector<8x128xf32>
    %23 = arith.truncf %22 : vector<8x128xf32> to vector<8x128xbf16>
    %c0_14 = arith.constant 0 : index
    %c0_15 = arith.constant 0 : index
    %24 = vector.load %arg6[%c0_14, %c0_15] : memref<8x128xbf16, #tpu.memory_space<vmem>>, vector<8x128xbf16>
    tpu.vector_store %arg6[%c0_14, %c0_15], %23 {strides = array<i32>} : memref<8x128xbf16, #tpu.memory_space<vmem>>, vector<8x128xbf16>,
    return
  }
  func.func @transform_0(%arg0: i32) -> (i32, i32) {
    %c0_i32 = arith.constant 0 : i32
    %c0_i32_0 = arith.constant 0 : i32
    return %arg0, %c0_i32 : i32, i32
  }
  func.func @transform_1(%arg0: i32) -> (i32, i32) {
    %c0_i32 = arith.constant 0 : i32
    %c0_i32_0 = arith.constant 0 : i32
    %c0_i32_1 = arith.constant 0 : i32
    return %c0_i32, %c0_i32_0 : i32, i32
  }
  func.func @transform_2(%arg0: i32) -> (i32, i32) {
    %c0_i32 = arith.constant 0 : i32
    %c0_i32_0 = arith.constant 0 : i32
    %c0_i32_1 = arith.constant 0 : i32
    return %c0_i32, %c0_i32_0 : i32, i32
  }
  func.func @transform_3(%arg0: i32) -> (i32, i32) {
    %c0_i32 = arith.constant 0 : i32
    %c0_i32_0 = arith.constant 0 : i32
    %c0_i32_1 = arith.constant 0 : i32
    return %c0_i32, %c0_i32_0 : i32, i32
  }
  func.func @transform_4(%arg0: i32) -> (i32, i32) {
    %c0_i32 = arith.constant 0 : i32
    %c0_i32_0 = arith.constant 0 : i32
    %c0_i32_1 = arith.constant 0 : i32
    return %c0_i32, %c0_i32_0 : i32, i32
  }
  func.func @transform_5(%arg0: i32) -> (i32, i32) {
    %c0_i32 = arith.constant 0 : i32
    %c0_i32_0 = arith.constant 0 : i32
    return %arg0, %c0_i32 : i32, i32
  }
}

</mosaic_0001>

<bundles_post_ra>
// kernel: fcn_forward.1
= control target key start
LH: loop header
LB: loop body
LE: loop exit
PB: predicated region body
PF: predicated region fallthrough
CT: control target
= control target key end

     0   :  { %10 = vsyncpa [#allocation3], 0  ;;  %s506_s0 = inlined_call_operand.vmem [shape: f32[8,128], index: 0, kind: input, shape index: {}]   ;;  %s507_s1 = inlined_call_operand.hbm [shape: bf16[128,128], index: 1, kind: input, shape index: {}]   ;;  %s508_s2 = inlined_call_operand.vmem [shape: f32[1,128], index: 2, kind: input, shape index: {}]   ;;  %s509_s3 = inlined_call_operand.hbm [shape: bf16[128,128], index: 3, kind: input, shape index: {}]   ;;  %s510_s4 = inlined_call_operand.vmem [shape: f32[1,128], index: 4, kind: input, shape index: {}]   ;;  %s511_s5 = inlined_call_operand.vmem [shape: bf16[8,128], index: 5, kind: output, shape index: {}]  }
   0x1   :  { %11 = vsyncpa [#allocation5], 0  ;;  %s434_s18 = smov [#allocation2]   ;;  %s386_s22 = scalar_lea.hbm %s507_s1, 1024 }
   0x2   :  { %s19_s19 = sshll.u32 %s434_s18, 4  ;;  %p387_p0 = scmp.ne.s32.totalorder %s507_s1, %s386_s22  ;;  %s20_s19 = int_to_ptr.vmem [resolvable:$true] %s19_s19 }
   0x3   :  { %p390_p1 = scmp.lt.u32.totalorder %s386_s22, %s507_s1 }
   0x5   :  { %p392_p2 = pnand %p390_p1, %p387_p0 }
   0x7   :  { %395 = shalt.err (!%p392_p2)
}
   0x8   :  { %s396_s27 = scalar_lea.vmem %s20_s19, 1024  ;;  %p401_p4 = scmp.lt.s32.totalorder %s20_s19, %s20_s19 }
   0x9   :  { %p397_p3 = scmp.ne.s32.totalorder %s20_s19, %s396_s27  ;;  %p402_p5 = scmp.lt.s32.totalorder %s396_s27, %s396_s27 }
   0xb   :  { %p403_p6 = por %p402_p5, %p401_p4 }
   0xd   :  { %p404_p7 = pnand %p403_p6, %p397_p3 }
   0xf   :  { %407 = shalt.err (!%p404_p7)
}
  0x10   :  { %s435_s28 = smov 64   ;;  %s436_s29 = smov 4  }
  0x11   :  { %25 = dma.hbm_to_vmem [thread:$0]  %s507_s1, 1024, %s20_s19, [#allocation3], %s435_s28, %s435_s28, %s436_s29  }
  0x12   :  { %s437_s7 = smov [#allocation4]   ;;  %s408_s11 = scalar_lea.hbm %s509_s3, 1024 }
  0x13   :  { %s33_s8 = sshll.u32 %s437_s7, 4  ;;  %p409_p8 = scmp.ne.s32.totalorder %s509_s3, %s408_s11  ;;  %s34_s8 = int_to_ptr.vmem [resolvable:$true] %s33_s8 }
  0x14   :  { %p412_p9 = scmp.lt.u32.totalorder %s408_s11, %s509_s3 }
  0x16   :  { %p414_p10 = pnand %p412_p9, %p409_p8 }
  0x18   :  { %417 = shalt.err (!%p414_p10)
}
  0x19   :  { %s418_s16 = scalar_lea.vmem %s34_s8, 1024  ;;  %p423_p12 = scmp.lt.s32.totalorder %s34_s8, %s34_s8 }
  0x1a   :  { %p419_p11 = scmp.ne.s32.totalorder %s34_s8, %s418_s16  ;;  %p424_p13 = scmp.lt.s32.totalorder %s418_s16, %s418_s16 }
  0x1c   :  { %p425_p0 = por %p424_p13, %p423_p12 }
  0x1e   :  { %p426_p1 = pnand %p425_p0, %p419_p11 }
  0x20   :  { %429 = shalt.err (!%p426_p1)
}
  0x21   :  { %39 = dma.hbm_to_vmem [thread:$0]  %s509_s3, 1024, %s34_s8, [#allocation5], %s435_s28, %s435_s28, %s436_s29  }
  0x22   :  { %430 = dma.done.wait [#allocation3], 1024  }
  0x23   :  { %431 = vsyncadd [#allocation3], 4294966272 }
  0x24   :  { %432 = dma.done.wait [#allocation5], 1024  }
  0x25   :  { %433 = vsyncadd [#allocation5], 4294966272  ;;  %v438_v0 = vmov 0.0   ;;  %vm439_vm0 = vmmov 0   ;;  %v370_v1 = vld [vmem:[#allocation2] sm:$0xff]   ;;  %v371_v2 = vld [vmem:[#allocation2 + $0x8] sm:$0xff]  }
  0x26   :  { %324 = vmatprep.subr.bf16.mxu0 %v438_v0  ;;  %340 = vmatprep.mubr.msk.bf16.mxu0 %vm439_vm0, %v438_v0  ;;  %v372_v3 = vld [vmem:[#allocation2 + $0x10] sm:$0xff]   ;;  %v378_v4 = vld [vmem:[#allocation4] sm:$0xff]   ;;  %v373_v5 = vld [vmem:[#allocation2 + $0x18] sm:$0xff]  }
  0x27   :  { %344 = vmatprep.subr.bf16.mxu1 %v438_v0  ;;  %360 = vmatprep.mubr.msk.bf16.mxu1 %vm439_vm0, %v438_v0  ;;  %v379_v6 = vld [vmem:[#allocation4 + $0x8] sm:$0xff]   ;;  %v374_v7 = vld [vmem:[#allocation2 + $0x20] sm:$0xff]   ;;  %v380_v8 = vld [vmem:[#allocation4 + $0x10] sm:$0xff]  }
  0x28   :  { %325 = vmatpush3.bf16.msra.mxu0 %v370_v1  ;;  %345 = vmatpush3.bf16.msra.mxu1 %v378_v4  ;;  %v375_v9 = vld [vmem:[#allocation2 + $0x28] sm:$0xff]   ;;  %v381_v10 = vld [vmem:[#allocation4 + $0x18] sm:$0xff]   ;;  %v376_v11 = vld [vmem:[#allocation2 + $0x30] sm:$0xff]  }
  0x29   :  { %326 = vmatprep.subr.bf16.mxu0 %v438_v0  ;;  %346 = vmatprep.subr.bf16.mxu1 %v438_v0  ;;  %v382_v12 = vld [vmem:[#allocation4 + $0x20] sm:$0xff]   ;;  %v377_v13 = vld [vmem:[#allocation2 + $0x38] sm:$0xff]   ;;  %v383_v15 = vld [vmem:[#allocation4 + $0x28] sm:$0xff]  }
  0x2a   :  { %v49_v14 = vld [vmem:[%s506_s0] sm:$0xff]  ;;  %v384_v17 = vld [vmem:[#allocation4 + $0x30] sm:$0xff]   ;;  %v385_v18 = vld [vmem:[#allocation4 + $0x38] sm:$0xff]  }
  0x2b   :  { %v50_v16 = vpack.c.bf16 %v49_v14, %v49_v14  ;;  %v288_v19 = vld [vmem:[%s508_s2] ss:$0 sm:$0xff] }
  0x2c   :  { %327 = vmatpush3.bf16.msra.mxu0 %v371_v2  ;;  %347 = vmatpush3.bf16.msra.mxu1 %v379_v6  ;;  %v297_v28 = vld [vmem:[%s510_s4] ss:$0 sm:$0xff] }
  0x2d   :  { %328 = vmatprep.subr.bf16.mxu0 %v438_v0  ;;  %348 = vmatprep.subr.bf16.mxu1 %v438_v0 }
  0x30   :  { %329 = vmatpush3.bf16.msra.mxu0 %v372_v3  ;;  %349 = vmatpush3.bf16.msra.mxu1 %v380_v8 }
  0x31   :  { %330 = vmatprep.subr.bf16.mxu0 %v438_v0  ;;  %350 = vmatprep.subr.bf16.mxu1 %v438_v0 }
  0x34   :  { %331 = vmatpush3.bf16.msra.mxu0 %v373_v5  ;;  %351 = vmatpush3.bf16.msra.mxu1 %v381_v10 }
  0x35   :  { %332 = vmatprep.subr.bf16.mxu0 %v438_v0  ;;  %352 = vmatprep.subr.bf16.mxu1 %v438_v0 }
  0x38   :  { %333 = vmatpush3.bf16.msra.mxu0 %v374_v7  ;;  %353 = vmatpush3.bf16.msra.mxu1 %v382_v12 }
  0x39   :  { %334 = vmatprep.subr.bf16.mxu0 %v438_v0  ;;  %354 = vmatprep.subr.bf16.mxu1 %v438_v0 }
  0x3c   :  { %335 = vmatpush3.bf16.msra.mxu0 %v375_v9  ;;  %355 = vmatpush3.bf16.msra.mxu1 %v383_v15 }
  0x3d   :  { %336 = vmatprep.subr.bf16.mxu0 %v438_v0  ;;  %356 = vmatprep.subr.bf16.mxu1 %v438_v0 }
  0x40   :  { %337 = vmatpush3.bf16.msra.mxu0 %v376_v11  ;;  %357 = vmatpush3.bf16.msra.mxu1 %v384_v17 }
  0x41   :  { %338 = vmatprep.subr.bf16.mxu0 %v438_v0  ;;  %358 = vmatprep.subr.bf16.mxu1 %v438_v0 }
  0x44   :  { %339 = vmatpush3.bf16.msra.mxu0 %v377_v13  ;;  %359 = vmatpush3.bf16.msra.mxu1 %v385_v18 }
  0x47   :  { %341 = vmatmul.mubr.bf16.vlgmr.msra.gmra.mrb[0].mxu0 %v50_v16 }
 0x11a   :  { %v156_v20 = vpop.f32.mrb[0].mxu0 }
 0x11b   :  { %v157_v21 = vadd.f32 %v288_v19, %v156_v20  ;;  %v342_v22 = vpop.f32.mrb[1].mxu0 }
 0x11c   :  { %v159_v23 = vpop.f32.mrb[2].mxu0 }
 0x11d   :  { %vm162_vm1 = vcmp.ge.f32.partialorder %v157_v21, 0.0  ;;  %v163_v24 = vmul.f32 0.01, %v157_v21  ;;  %v343_v25 = vpop.f32.mrb[3].mxu0 }
 0x11f   :  { %v164_v26 = vsel %vm162_vm1, %v157_v21, %v163_v24 }
 0x120   :  { %v165_v27 = vpack.c.bf16 %v164_v26, %v164_v26 }
 0x122   :  { %361 = vmatmul.mubr.bf16.vlgmr.msra.gmra.mrb[0].mxu1 %v165_v27 }
 0x1f5   :  { %v271_v29 = vpop.f32.mrb[0].mxu1 }
 0x1f6   :  { %v272_v30 = vadd.f32 %v297_v28, %v271_v29  ;;  %v362_v31 = vpop.f32.mrb[1].mxu1 }
 0x1f7   :  { %v274_v32 = vpop.f32.mrb[2].mxu1 }
 0x1f8   :  { %vm277_vm2 = vcmp.ge.f32.partialorder %v272_v30, 0.0  ;;  %v278_v33 = vmul.f32 0.01, %v272_v30  ;;  %v363_v34 = vpop.f32.mrb[3].mxu1 }
 0x1fa   :  { %v279_v35 = vsel %vm277_vm2, %v272_v30, %v278_v33 }
 0x1fb   :  { %v280_v36 = vpack.c.bf16 %v279_v35, %v279_v35 }
 0x1fd   :  { %281 = vst [vmem:[%s511_s5] sm:$0xf] %v280_v36 }
 0x1fe   :  { %286 = vsyncpa [#allocation3], 1 }
 0x1ff   :  { %287 = vsyncpa [#allocation5], 1 }

</bundles_post_ra>
